<compile_context>
chip_gen: v7x
topology: tpu7x:2x2x1
jax: 0.10.0
libtpu: 0.0.40
codegen_flags: <defaults>
</compile_context>

<pallas_src>
import math

import jax
import jax.numpy as jnp
from jax.experimental import pallas as pl
from jax.experimental.pallas import tpu as pltpu


# ----------------------------- Pallas kernel ------------------------------ #

def _channel_mix_kernel(att_ref, x_ref, out_ref):
    """One (batch-block, time-tile) grid cell.

    att_ref : (BB, R, C)  softmaxed attention weights (zero rows for padding)
    x_ref   : (BB, C, TT) raw EEG time tile (un-gathered, all channels)
    out_ref : (BB, R, TT)
    """
    att = att_ref[...].astype(jnp.float32)
    xt = x_ref[...].astype(jnp.float32)
    out = jnp.einsum("brc,bct->brt", att, xt,
                     preferred_element_type=jnp.float32)
    out_ref[...] = out.astype(out_ref.dtype)


# ----------------------------- Tiling helpers ------------------------------ #

def _largest_divisor_at_most(n, cap):
    cap = max(1, min(n, cap))
    for d in range(cap, 0, -1):
        if n % d == 0:
            return d
    return 1


def _vmem_plan():
    """(block_budget_bytes, vmem_limit_bytes), sized per TPU generation."""
    try:
        cap = int(pltpu.get_tpu_info().vmem_capacity_bytes)
    except Exception:
        cap = 64 << 20  # conservative fallback (v7x per-TC VMEM)
    block_budget = max(8 << 20, cap // 4)              # double-buffered blocks
    vmem_limit = min(max(32 << 20, cap // 2), 96 << 20)
    return block_budget, vmem_limit


def _choose_tiling(B, C, R, T, block_budget, max_time_tile):
    """Pick (batch_block, time_tile, n_time_blocks)."""
    per_col = 2 * (C + R) * 4                 # dbl-buffered x+out bytes / time col
    tt_cap = max(128, min(max_time_tile,
                          (block_budget // per_col) // 128 * 128))
    t128 = pl.cdiv(T, 128) * 128

    if t128 <= tt_cap:
        tt, n_t = T, 1                        # whole time axis (full-dim block)
    else:
        tt, n_t = tt_cap, pl.cdiv(T, tt_cap)  # ragged tail handled by Pallas

    # Batch blocking when the time grid is too short to amortize step overhead.
    bb = 1
    if n_t <= 2 and B > 1:
        bb_cap = max(1, block_budget // (per_col * max(tt, 128)))
        bb = _largest_divisor_at_most(B, bb_cap)

    # Megacore (v7x: 2 TCs): keep at least 2 grid cells when possible.
    if (B // bb) * n_t < 2:
        if bb > 1:
            bb = _largest_divisor_at_most(B, max(1, bb // 2))
        elif T > 128:
            tt = pl.cdiv(pl.cdiv(T, 2), 128) * 128
            n_t = pl.cdiv(T, tt)
    return bb, tt, n_t


# ----------------------------- Kernel wrapper ------------------------------ #

def regions2bins_channel_mix(x, att, *, max_time_tile=8192, interpret=False):
    """Attention-weighted channel mix: out[b, r, :] = sum_c att[b, r, c] * x[b, c, :].

    x   : (B, C, T) float32
    att : (B, R, C) float32, R a multiple of 8 (zero rows allowed)
    returns (B, R, T)
    """
    B, C, T = x.shape
    R = att.shape[1]
    assert att.shape == (B, R, C), (att.shape, (B, R, C))
    assert R % 8 == 0, "R must be padded to a multiple of 8"

    block_budget, vmem_limit = _vmem_plan()
    bb, tt, n_t = _choose_tiling(B, C, R, T, block_budget, max_time_tile)

    return pl.pallas_call(
        _channel_mix_kernel,
        out_shape=jax.ShapeDtypeStruct((B, R, T), x.dtype),
        grid_spec=pltpu.PrefetchScalarGridSpec(
            num_scalar_prefetch=0,
            grid=(B // bb, n_t),
            in_specs=[
                pl.BlockSpec((bb, R, C), lambda b, t: (b, 0, 0)),
                pl.BlockSpec((bb, C, tt), lambda b, t: (b, 0, t)),
            ],
            out_specs=pl.BlockSpec((bb, R, tt), lambda b, t: (b, 0, t)),
        ),
        compiler_params=pltpu.CompilerParams(
            dimension_semantics=("parallel", "parallel"),
            vmem_limit_bytes=vmem_limit),
        interpret=interpret,
    )(att, x)


# ------------------- Host-side attention (tiny (B,R,C) op) ----------------- #

def compute_region_attention(precomputed, w_all, bias_all, sel_all):
    """scores[b,r,c] = <precomputed[b,c,:], w_all[r,:]> + bias[r], masked softmax
    over each region's member channels (sel_all[r,c] == 1)."""
    # Elementwise-multiply + f32 sum (exact match with the reference math).
    scores = jnp.sum(precomputed[:, None, :, :] * w_all[None, :, None, :],
                     axis=-1) + bias_all[None, :, :]                 # (B, R, C)
    scores = jnp.where(sel_all[None] > 0.0, scores, -1e30)
    m = jnp.max(scores, axis=-1, keepdims=True)
    e = jnp.exp(scores - m) * sel_all[None]
    return e / jnp.sum(e, axis=-1, keepdims=True)                    # (B, R, C)


# ----------------------------- Module wrapper ------------------------------ #

class SharedPrecomputingRegions2BinsPallas:
    """JAX/Pallas port of SharedPrecomputingRegions2Bins.forward.

    `paths` is a tuple over bins; each bin is a tuple over regions of integer
    channel indices (ChannelSplit.channel_splits[system][region] mapped
    through channel_name_to_index at construction time).
    """

    def __init__(self, key, paths, num_channels, num_kernels):
        self.num_channels = num_channels
        self.num_kernels = num_kernels
        feat = 2 * num_kernels
        self.paths = tuple(tuple(tuple(int(c) for c in g) for g in p)
                           for p in paths)
        self.bin_region_counts = tuple(len(p) for p in self.paths)

        ws, bs, sels = [], [], []
        self.bins = []   # per-bin params kept only for the reference check
        for path in self.paths:
            n_regions = len(path)
            key, kw, kb = jax.random.split(key, 3)
            w = jax.random.normal(kw, (n_regions, feat), dtype=jnp.float32)
            w = w * (1.0 / math.sqrt(feat))
            b = 0.01 * jax.random.normal(kb, (n_regions, 1), dtype=jnp.float32)
            sel_rows = []
            for group in path:
                assert len(group) > 0, "empty region would give NaN softmax"
                row = [0.0] * num_channels
                for c in group:
                    row[c] = 1.0
                sel_rows.append(row)
            sel = jnp.asarray(sel_rows, dtype=jnp.float32)
            ws.append(w)
            bs.append(b)
            sels.append(sel)
            self.bins.append(dict(w=w, b=b, path=path))

        self.w_all = jnp.concatenate(ws, axis=0)        # (R_total, F)
        self.bias_all = jnp.concatenate(bs, axis=0)     # (R_total, 1)
        self.sel_all = jnp.concatenate(sels, axis=0)    # (R_total, C)
        self.r_total = int(self.w_all.shape[0])
        self.r_pad = pl.cdiv(self.r_total, 8) * 8       # sublane-aligned rows

    def __call__(self, x, precomputed, *, max_time_tile=8192):
        """x: (B, num_channels, T); precomputed: (B, num_channels, 2*num_kernels)."""
        att = compute_region_attention(precomputed, self.w_all, self.bias_all,
                                       self.sel_all)                 # (B, R, C)
        if self.r_pad != self.r_total:
            att = jnp.pad(att, ((0, 0), (0, self.r_pad - self.r_total), (0, 0)))
        fused = regions2bins_channel_mix(x, att, max_time_tile=max_time_tile)
        outs, start = [], 0
        for n in self.bin_region_counts:
            outs.append(fused[:, start:start + n, :])
            start += n
        return tuple(outs)


# ------------------- Pure-JAX reference (original gathered form) ----------- #

def _bin_forward_ref(x, precomputed, path, w, bias):
    """Per-bin reference mirroring the original padded-gather formulation."""
    c_max = max(len(g) for g in path)
    idx, msk = [], []
    for g in path:
        pad = c_max - len(g)
        idx.append(list(g) + [0] * pad)
        msk.append([1.0] * len(g) + [0.0] * pad)
    idx = jnp.asarray(idx, jnp.int32)
    mask = jnp.asarray(msk, jnp.float32)

    pre_g = precomputed[:, idx, :]                       # (B, R, Cmax, F)
    x_g = x[:, idx, :]                                   # (B, R, Cmax, T)

    scores = jnp.sum(pre_g * w[None, :, None, :], axis=-1) + bias[None]  # (B,R,C)
    scores = jnp.where(mask[None] > 0.0, scores, -1e30)
    m = jnp.max(scores, axis=-1, keepdims=True)
    e = jnp.exp(scores - m) * mask[None]
    att = e / jnp.sum(e, axis=-1, keepdims=True)         # (B, R, Cmax)
    return jnp.sum(att[:, :, :, None] * x_g, axis=2)     # (B, R, T)


if __name__ == "__main__":
    key = jax.random.PRNGKey(0)

    num_channels = 12
    num_kernels = 8                                # -> 2*num_kernels = 16 feats
    feat = 2 * num_kernels

    # Two bins ("channel splits"); each path is a tuple of regions (channel idx).
    paths = (
        ((0, 1, 2), (3, 4, 5, 6), (7, 8), (9, 10, 11)),
        ((0, 3, 6, 9, 11), (1, 2, 4), (5, 7, 8, 10)),
    )

    key, k_m = jax.random.split(key)
    model = SharedPrecomputingRegions2BinsPallas(k_m, paths, num_channels,
                                                 num_kernels)

    # (batch, time, max_time_tile) — covers: single whole-T block, ragged
    # 128-aligned time tiles (OOB handling), and a batch-blocked (BB>1) grid.
    configs = ((2, 300, 8192), (3, 700, 256), (4, 300, 8192))
    for batch, time_steps, mtt in configs:
        key, k_x, k_p = jax.random.split(key, 3)
        x = jax.random.normal(k_x, (batch, num_channels, time_steps),
                              dtype=jnp.float32)
        precomputed = jax.random.normal(k_p, (batch, num_channels, feat),
                                        dtype=jnp.float32)

        outs = model(x, precomputed, max_time_tile=mtt)
        outs = jax.block_until_ready(outs)

        for out, bin_ in zip(outs, model.bins):
            ref = _bin_forward_ref(x, precomputed, bin_["path"], bin_["w"],
                                   bin_["b"])
            assert out.shape == ref.shape, (out.shape, ref.shape)
            max_err = float(jnp.max(jnp.abs(out - ref)))
            assert jnp.allclose(out, ref, rtol=1e-3, atol=1e-3), (
                f"mismatch (B={batch}, T={time_steps}, tile={mtt}): "
                f"max abs err {max_err}")

    print("KERNEL_OK")
</pallas_src>

<mosaic_0001>
module attributes {stable_mosaic.version = 11 : i64} {
  func.func @_channel_mix_kernel(%arg0: i32, %arg1: i32, %arg2: memref<1x8x12xf32, #tpu.memory_space<vmem>>, %arg3: memref<1x12x300xf32, #tpu.memory_space<vmem>>, %arg4: memref<1x8x300xf32, #tpu.memory_space<vmem>>) attributes {dimension_semantics = [#tpu.dimension_semantics<parallel>, #tpu.dimension_semantics<parallel>], iteration_bounds = array<i64: 2, 1>, scalar_prefetch = 0 : i64, scratch_operands = 0 : i64, tpu.core_type = #tpu.core_type<tc>, window_params = [{transform_indices = @transform_0, window_bounds = array<i64: 1, 8, 12>}, {transform_indices = @transform_1, window_bounds = array<i64: 1, 12, 300>}, {transform_indices = @transform_2, window_bounds = array<i64: 1, 8, 300>}]} {
    %c0 = arith.constant 0 : index
    %c0_0 = arith.constant 0 : index
    %c0_1 = arith.constant 0 : index
    %0 = vector.load %arg2[%c0, %c0_0, %c0_1] : memref<1x8x12xf32, #tpu.memory_space<vmem>>, vector<1x8x12xf32>
    %c0_2 = arith.constant 0 : index
    %c0_3 = arith.constant 0 : index
    %c0_4 = arith.constant 0 : index
    %1 = vector.load %arg3[%c0_2, %c0_3, %c0_4] : memref<1x12x300xf32, #tpu.memory_space<vmem>>, vector<1x12x300xf32>
    "tpu.trace_start"() <{level = 10 : i32, message = "brc,bct->brt"}> : () -> ()
    %cst = arith.constant dense<0.000000e+00> : vector<1x8x300xf32>
    %2 = tpu.matmul %0, %1, %cst {dimension_numbers = #tpu.dot_dimension_numbers<[2], [1], [1], [2], [0, 0, 0, 1, 1, 2], [0], [0]>} : vector<1x8x12xf32>, vector<1x12x300xf32>, vector<1x8x300xf32> -> vector<1x8x300xf32>
    "tpu.trace_stop"() : () -> ()
    %c0_5 = arith.constant 0 : index
    %c0_6 = arith.constant 0 : index
    %c0_7 = arith.constant 0 : index
    %3 = vector.load %arg4[%c0_5, %c0_6, %c0_7] : memref<1x8x300xf32, #tpu.memory_space<vmem>>, vector<1x8x300xf32>
    tpu.vector_store %arg4[%c0_5, %c0_6, %c0_7], %2 {strides = array<i32>} : memref<1x8x300xf32, #tpu.memory_space<vmem>>, vector<1x8x300xf32>,
    return
  }
  func.func @transform_0(%arg0: i32, %arg1: i32) -> (i32, i32, i32) {
    %c0_i32 = arith.constant 0 : i32
    %c0_i32_0 = arith.constant 0 : i32
    %c0_i32_1 = arith.constant 0 : i32
    return %arg0, %c0_i32, %c0_i32_0 : i32, i32, i32
  }
  func.func @transform_1(%arg0: i32, %arg1: i32) -> (i32, i32, i32) {
    %c0_i32 = arith.constant 0 : i32
    %c0_i32_0 = arith.constant 0 : i32
    return %arg0, %c0_i32, %arg1 : i32, i32, i32
  }
  func.func @transform_2(%arg0: i32, %arg1: i32) -> (i32, i32, i32) {
    %c0_i32 = arith.constant 0 : i32
    %c0_i32_0 = arith.constant 0 : i32
    return %arg0, %c0_i32, %arg1 : i32, i32, i32
  }
}

</mosaic_0001>

<bundles_post_ra>
// kernel: tpu_custom_call.1
= control target key start
LH: loop header
LB: loop body
LE: loop exit
PB: predicated region body
PF: predicated region fallthrough
CT: control target
= control target key end

     0   :  { %7 = vsyncpa [#allocation3], 0  ;;  %s773_s0 = inlined_call_operand.vmem [shape: f32[2,8,12], index: 0, kind: input, shape index: {}]   ;;  %s774_s1 = inlined_call_operand.vmem [shape: f32[2,12,300], index: 1, kind: input, shape index: {}]   ;;  %s775_s2 = inlined_call_operand.hbm [shape: f32[2,8,300], index: 2, kind: output, shape index: {}]  }
   0x1   :  { %9 = vsyncpa [#allocation3 + $0x1], 0  ;;  %s658_s9 = smov 0   ;;  %s660_s10 = smov 0  }
   0x2   :  { %s662_s11 = smov 0   ;;  %s664_s12 = smov 0  }
   0x3   :  { %s666_s13 = smov 0   ;;  %s668_s14 = smov 0  }
   0x4 LB: > { %s461_s15 = sadd.s32 4294967295, %s636_s14   ;;  %s462_s16 = sadd.s32 4294967294, %s636_s14   ;;  %s636_s14 = sphi %s668_s14, %s15_s14   ;;  %s632_s13 = sphi %s666_s13, %s782_s13   ;;  %s628_s12 = sphi %s664_s12, %s781_s12   ;;  %s624_s11 = sphi %s662_s11, %s780_s11   ;;  %s620_s10 = sphi %s660_s10, %s779_s10   ;;  %s616_s9 = sphi %s658_s9, %s778_s9  }
   0x5   : > { %s27_s17 = sadd.s32 1, %s632_s13  ;;  %s90_s18 = sadd.s32 1, %s624_s11 }
   0x6   : > { %p29_p0 = scmp.ge.s32.totalorder %s27_s17, 2  ;;  %p100_p1 = scmp.ne.s32.totalorder %s624_s11, %s620_s10 }
   0x7   : > { %p101_p2 = scmp.eq.s32.totalorder %s461_s15, 1  ;;  %p106_p3 = scmp.ne.s32.totalorder %s620_s10, %s616_s9 }
   0x8   : > { %s784_s17 = smov (%p29_p0, %s27_s17), 0  ;;  %p107_p5 = scmp.eq.s32.totalorder %s462_s16, 1 }
   0x9   : > { %p698_p4 = por %p101_p2, %p100_p1  ;;  %s85_s20 = ssub.s32 %s632_s13, %s784_s17 }
   0xa   : > { %p465_p6 = scmp.ge.s32.totalorder %s636_s14, 1  ;;  %p88_p7 = scmp.eq.s32.totalorder %s85_s20, 0 }
   0xb   : > { %p705_p8 = por %p107_p5, %p106_p3  ;;  %p145_p9 = scmp.lt.s32.totalorder %s636_s14, 3 }
   0xc   : > { %s711_s22 = scalar_select %p88_p7, %s624_s11, %s90_s18  }
   0xd   : > { %p146_p10 = pnand %p465_p6, %p145_p9 }
   0xe   : > { %p175_p11 = scmp.lt.s32.totalorder (!%p146_p10), %s628_s12, 1  ;;  %v638_v0 = vmov (!%p146_p10), 0.0|0.0   ;;  %v639_v1 = vmov (!%p146_p10), 0.0   ;;  %vm640_vm0 = vmmov (!%p146_p10), 0   ;;  %vm201_vm1 = vcmask (!%p146_p10), 1043456   ;;  %s172_s4 = sand.u32 (!%p146_p10), 1, %s620_s10  }
   0xf   : > { %149 = sbr.rel (%p146_p10) target bundleno = 261 (0x105), region = 28  ;;  %492 = vmatprep.subr.bf16.mxu1 (!%p146_p10), %v638_v0  ;;  %275 = vmatprep.mubr.f32.mxu0 (!%p146_p10), %v639_v1  ;;  %vm641_vm2 = vmmov (!%p146_p10), 1   ;;  %vm197_vm4 = vcmask (!%p146_p10), 97280   ;;  %vm354_vm5 = vcmask (!%p146_p10), 359424  }
  0x10   : > { %483 = vmatprep.mubr.msk.f32.mxu1 (!%p146_p10), %vm640_vm0, %v639_v1  ;;  %vm487_vm3 = vmpackc.low (!%p146_p10), %vm201_vm1, %vm641_vm2  ;;  %s496_s5 = smul.u32 (!%p146_p10), 24, %s172_s4 }
  0x11   : > { %s498_s6 = smul.u32 (!%p146_p10), 384, %s628_s12 }
  0x12   : > { %s174_s7 = scalar_lea.vmem (!%p146_p10), [#allocation2], %s496_s5 }
  0x13   : > { %s373_s8 = sshll.u32 (!%p146_p10), %s174_s7, 4  ;;  %s726_s18 = scalar_lea.hbm (!%p146_p10), %s775_s2, %s498_s6  ;;  %s728_s8 = int_to_ptr.vmem [resolvable:$true] %s373_s8 }
  0x14   : > { %s558_s20 = scalar_lea.vmem (!%p146_p10), %s728_s8, 384 }
  0x15   : > { %p559_p12 = scmp.ne.s32.totalorder (!%p146_p10), %s728_s8, %s558_s20 }
  0x16   : > { %s176_s23 = scalar_select %p175_p11, %s628_s12, 1 }
  0x17   : > { %s357_s12 = scalar_lea.sflag [#allocation3], %s172_s4  ;;  %p560_p13 = pnand %p559_p12, %p698_p4 }
  0x18   : > { %s497_s24 = smul.u32 48, %s176_s23  ;;  %s466_s25 = sshll.u32 %s176_s23, 3 }
  0x19   : > { %s178_s3 = scalar_lea.vmem %s773_s0, %s466_s25  ;;  %p561_p0 = pneg %p560_p13 }
  0x1a   : > { %s187_s28 = scalar_lea.vmem %s774_s1, %s497_s24  ;;  %v190_v11 = vld [vmem:[%s178_s3] sm:$0xff]  ;;  %s642_s23 = smov [#allocation2]  }
  0x1b   : > { %v192_v2 = vld [vmem:[%s187_s28 + $0x8] sm:$0xff]  ;;  %v195_v3 = vld [vmem:[%s187_s28 + $0x20] sm:$0xf]  ;;  %v194_v6 = vld [vmem:[%s187_s28 + $0x18] sm:$0xf]  ;;  %s562_s24 = sshll.u32 %s642_s23, 4  ;;  %s563_s24 = int_to_ptr.vmem [resolvable:$false] %s562_s24 }
  0x1c   : > { %v191_v4 = vld [vmem:[%s187_s28] sm:$0xff]  ;;  %v486_v5 = vpack.c.bf16 %v195_v3, %v192_v2  ;;  %v193_v7 = vld [vmem:[%s187_s28 + $0x10] sm:$0xff]  ;;  %v196_v8 = vld [vmem:[%s187_s28 + $0x28] sm:$0xf]  ;;  %s564_s25 = scalar_lea.vmem %s563_s24, 768  ;;  %p565_p1 = scmp.lt.s32.totalorder %s728_s8, %s563_s24 }
  0x1d   : > { %v489_v9 = vpack.c.bf16 %v194_v6, %v191_v4  ;;  %v493_v10 = vpack.c.bf16 %v196_v8, %v193_v7  ;;  %p566_p2 = scmp.lt.s32.totalorder %s564_s25, %s558_s20 }
  0x1e   : > { %488 = vmatprep.subr.msk.bf16.mxu0 %vm487_vm3, %v486_v5 }
  0x1f   : > { %491 = vmatpush1.bf16.msk.msra.mxu0 %vm487_vm3, %v489_v9  ;;  %495 = vmatpush3.bf16.msk.msra.mxu1 %vm487_vm3, %v493_v10  ;;  %p567_p3 = por %p566_p2, %p565_p1 }
  0x21   : > { %p568_p5 = pnand %p567_p3, %p561_p0 }
  0x22   : > { %470 = vmatmul.mubr.msk.f32.vlgmr.msra.gmra.mrb[0].mxu0 %vm197_vm4, %v190_v11  ;;  %484 = vmatmul.mubr.msk.f32.vlgmr.msra.gmra.mrb[0].mxu1 %vm197_vm4, %v190_v11 }
  0xf5   : > { %v277_v12 = vpop.f32.mrb[0].mxu0  ;;  %v348_v13 = vpop.f32.mrb[0].mxu1 }
  0xf6   : > { %352 = vst [vmem:[%s174_s7] sm:$0xff] %v277_v12  ;;  %355 = vst.msk [vmem:[%s174_s7 + $0x10] sm:$0xff] %vm354_vm5, %v348_v13  ;;  %v279_v14 = vpop.f32.mrb[1].mxu0  ;;  %v485_v15 = vpop.f32.mrb[1].mxu1 }
  0xf7   : > { %353 = vst [vmem:[%s174_s7 + $0x8] sm:$0xff] %v279_v14 }
  0xf8   : > { %571 = shalt.err (!%p568_p5)
}
  0xf9   : > { %s572_s26 = scalar_lea.hbm %s726_s18, 384  ;;  %s576_s29 = scalar_lea.hbm %s775_s2, 768 }
  0xfa   : > { %p573_p6 = scmp.ne.s32.totalorder %s726_s18, %s572_s26  ;;  %p577_p10 = scmp.lt.u32.totalorder %s726_s18, %s775_s2 }
  0xfb   : > { %p578_p11 = scmp.lt.u32.totalorder %s576_s29, %s572_s26  ;;  %p580_p13 = scmp.lt.u32.totalorder %s572_s26, %s726_s18 }
  0xfc   : > { %p574_p7 = pnand %p573_p6, %p698_p4 }
  0xfd   : > { %p579_p12 = por %p578_p11, %p577_p10 }
  0xfe   : > { %p575_p9 = pneg %p574_p7 }
  0xff   : > { %p581_p0 = por %p580_p13, %p579_p12 }
 0x101   : > { %p582_p1 = pnand %p581_p0, %p575_p9 }
 0x103   : > { %585 = shalt.err (!%p582_p1)
}
 0x104   : > { %499 = dma.vmem_to_hbm [thread:$0]  (%p698_p4), %s728_s8, 384, %s726_s18, %s357_s12  }
 0x105 PF: > { %p505_p2 = scmp.ge.s32.totalorder %s636_s14, 2  ;;  %s385_s4 = sand.u32 1, %s616_s9  }
 0x106   : > { %s386_s5 = scalar_lea.sflag [#allocation3], %s385_s4 }
 0x107   : > { %p502_p3 = pnand %p505_p2, %p705_p8 }
 0x109   : > { %611 = dma.done.wait (!%p502_p3), %s386_s5, 384  }
 0x10a   : > { %613 = vsyncadd (!%p502_p3), %s386_s5, 4294966912  ;;  %s15_s14 = sadd.s32 1, %s636_s14   ;;  %s778_s9 = smov %s620_s10 }
 0x10b   : > { %p12_p5 = scmp.ge.s32.totalorder %s15_s14, 4   ;;  %s779_s10 = smov %s624_s11 }
 0x10c   : > { %s780_s11 = smov %s711_s22  ;;  %s781_s12 = smov %s632_s13 }
 0x10d   : > { %s782_s13 = smov %s784_s17  ;;  %14 = sbr.rel (!%p12_p5) target bundleno = 4 (0x4), region = 66 }
 0x114   :  { %391 = vsyncpa [#allocation3], 1 }
 0x115   :  { %393 = vsyncpa [#allocation3 + $0x1], 1 }

</bundles_post_ra>
